<compile_context>
chip_gen: v5e
topology: v5e:2x2
jax: 0.10.0
libtpu: 0.0.40
codegen_flags: <defaults>
</compile_context>

<pallas_src>
import jax
import jax.numpy as jnp
from jax.experimental import pallas as pl
from jax.experimental.pallas import tpu as pltpu


def _round_up(x, m):
    return ((x + m - 1) // m) * m


def _kge_score_fused_rel_kernel(h_ref, t_ref, rel_ref, ridx_ref, out_ref):
    """Score tb triples per grid step, gathering relation rows in-kernel.

    h_ref, t_ref: (tb, D) gathered head/tail embedding tiles (VMEM).
    rel_ref:      (R_pad, D) full relation table, VMEM-resident across steps.
    ridx_ref:     (tb, 1) int32 relation indices for this tile.
    out_ref:      (1, tb) lane-dense score tile.
    """
    h = h_ref[...]                                   # (tb, D)
    t = t_ref[...]                                   # (tb, D)
    rel_tab = rel_ref[...]                           # (R_pad, D)
    ridx = ridx_ref[...]                             # (tb, 1) int32
    tb = h.shape[0]
    r_pad = rel_tab.shape[0]

    # One-hot gather of relation rows on the (otherwise idle) MXU.
    onehot = (jax.lax.broadcasted_iota(jnp.int32, (tb, r_pad), 1) == ridx)
    onehot = onehot.astype(jnp.float32)              # (tb, R_pad)
    r = jnp.dot(onehot, rel_tab,
                preferred_element_type=jnp.float32)  # (tb, D)

    diff = h + r - t                                 # VPU elementwise
    sq = jnp.sum(diff * diff, axis=-1, keepdims=True)  # (tb, 1) lane reduce (XLU)
    out_ref[...] = (-jnp.sqrt(sq)).T                 # (1, tb) lane-dense store


def _kge_score_pregathered_kernel(h_ref, r_ref, t_ref, out_ref):
    """Fallback: all three embedding tiles pre-gathered outside the kernel."""
    diff = h_ref[...] + r_ref[...] - t_ref[...]
    sq = jnp.sum(diff * diff, axis=-1, keepdims=True)
    out_ref[...] = (-jnp.sqrt(sq)).T


def model_forward(ent_emb, rel_emb, batch_h, batch_r, batch_t, *, block_rows=2048):
    """Pallas equivalent of Model.forward / get_scores for a TransE-style scorer.

    ent_emb: (E, D) float32 entity embedding table
    rel_emb: (R, D) float32 relation embedding table
    batch_h, batch_r, batch_t: (B,) int32 triple indices
    returns: (B,) float32 scores (flattened, as in get_scores)
    """
    E, D = ent_emb.shape
    R = rel_emb.shape[0]
    B = batch_h.shape[0]

    # ---- batch tiling ------------------------------------------------------
    b128 = _round_up(B, 128)
    tb = min(_round_up(block_rows, 128), b128)
    # Keep >= 4 grid steps when the batch allows, so v7x's two TensorCores
    # each get >= 2 blocks and double-buffering stays effective.
    if (b128 // tb) < 4 and b128 >= 4 * 128:
        tb = _round_up(pl.cdiv(b128, 4), 128)
    b_pad = _round_up(B, tb)
    grid = (b_pad // tb,)
    pad = b_pad - B

    h_idx = jnp.pad(batch_h.astype(jnp.int32), (0, pad))  # pad with row 0 (valid)
    r_idx = jnp.pad(batch_r.astype(jnp.int32), (0, pad))
    t_idx = jnp.pad(batch_t.astype(jnp.int32), (0, pad))

    # Entity gathers (get_head/tail_embeddings) via XLA gather into dense tiles.
    h_g = jnp.take(ent_emb, h_idx, axis=0)   # (b_pad, D)
    t_g = jnp.take(ent_emb, t_idx, axis=0)   # (b_pad, D)

    row_spec = pl.BlockSpec((tb, D), lambda i: (i, 0))
    out_spec = pl.BlockSpec((1, tb), lambda i: (0, i))

    # Raise the scoped-VMEM limit only for oversized tiles (v5e default: 16 MiB).
    vmem_limit = 64 * 1024 * 1024 if tb > 2048 else None
    compiler_params = pltpu.CompilerParams(
        dimension_semantics=("parallel",),       # independent batch blocks
        vmem_limit_bytes=vmem_limit,
    )

    # Relation table stays in VMEM if small enough for the one-hot gather to
    # be cheap (table <= 2 MiB and one-hot intermediate <= tb*512*4 bytes).
    r_pad_rows = max(8, _round_up(R, 8))
    use_fused_rel = (r_pad_rows <= 512) and (r_pad_rows * D * 4 <= 2 * 1024 * 1024)

    if use_fused_rel:
        rel_tab = rel_emb
        if r_pad_rows != R:
            rel_tab = jnp.pad(rel_emb, ((0, r_pad_rows - R), (0, 0)))
        cost = pl.CostEstimate(
            flops=int(grid[0] * (2 * tb * r_pad_rows * D + 4 * tb * D)),
            transcendentals=int(b_pad),
            bytes_accessed=int((2 * b_pad * D + r_pad_rows * D) * 4
                               + b_pad * 4 + b_pad * 4),
        )
        scores = pl.pallas_call(
            _kge_score_fused_rel_kernel,
            out_shape=jax.ShapeDtypeStruct((1, b_pad), jnp.float32),
            grid=grid,
            in_specs=[
                row_spec,                                            # h tiles
                row_spec,                                            # t tiles
                pl.BlockSpec((r_pad_rows, D), lambda i: (0, 0)),     # rel table (resident)
                pl.BlockSpec((tb, 1), lambda i: (i, 0)),             # relation indices
            ],
            out_specs=out_spec,
            compiler_params=compiler_params,
            cost_estimate=cost,
        )(h_g, t_g, rel_tab, r_idx.reshape(b_pad, 1))
    else:
        r_g = jnp.take(rel_emb, r_idx, axis=0)
        cost = pl.CostEstimate(
            flops=int(4 * b_pad * D),
            transcendentals=int(b_pad),
            bytes_accessed=int(3 * b_pad * D * 4 + b_pad * 4),
        )
        scores = pl.pallas_call(
            _kge_score_pregathered_kernel,
            out_shape=jax.ShapeDtypeStruct((1, b_pad), jnp.float32),
            grid=grid,
            in_specs=[row_spec, row_spec, row_spec],
            out_specs=out_spec,
            compiler_params=compiler_params,
            cost_estimate=cost,
        )(h_g, r_g, t_g)

    # .flatten() as in get_scores, dropping the padded rows.
    return scores[0, :B]


def _xavier_uniform(key, shape):
    # matches torch.nn.init.xavier_uniform_ for a 2-D (total, dim) tensor
    fan_out, fan_in = shape
    bound = (6.0 / (fan_in + fan_out)) ** 0.5
    return jax.random.uniform(key, shape, jnp.float32, -bound, bound)


if __name__ == "__main__":
    ent_tot, rel_tot = 32, 8      # Model(ent_tot, rel_tot)
    dim = 128                     # embedding dimension
    batch = 8                     # number of triples in the batch

    root = jax.random.PRNGKey(0)
    k_ent, k_rel, k_h, k_r, k_t = jax.random.split(root, 5)

    # create_embedding(..., init='xavier_uniform') for entity and relation tables
    ent_emb = _xavier_uniform(k_ent, (ent_tot, dim))
    rel_emb = _xavier_uniform(k_rel, (rel_tot, dim))

    # data = {'batch_h': ..., 'batch_r': ..., 'batch_t': ...}
    batch_h = jax.random.randint(k_h, (batch,), 0, ent_tot, jnp.int32)
    batch_r = jax.random.randint(k_r, (batch,), 0, rel_tot, jnp.int32)
    batch_t = jax.random.randint(k_t, (batch,), 0, ent_tot, jnp.int32)

    scores = model_forward(ent_emb, rel_emb, batch_h, batch_r, batch_t)
    scores = jax.block_until_ready(scores)

    # pure-JAX reference of the same forward pass (gather + TransE L2 score)
    h = ent_emb[batch_h]
    r = rel_emb[batch_r]
    t = ent_emb[batch_t]
    ref = -jnp.linalg.norm(h + r - t, axis=-1).reshape(-1)

    assert scores.shape == (batch,)
    assert jnp.allclose(scores, ref, atol=1e-5, rtol=1e-5), (scores, ref)

    print("KERNEL_OK")
</pallas_src>

<mosaic_0001>
module attributes {stable_mosaic.version = 11 : i64} {
  func.func @_kge_score_fused_rel_kernel(%arg0: i32, %arg1: memref<128x128xf32, #tpu.memory_space<vmem>>, %arg2: memref<128x128xf32, #tpu.memory_space<vmem>>, %arg3: memref<8x128xf32, #tpu.memory_space<vmem>>, %arg4: memref<128x1xi32, #tpu.memory_space<vmem>>, %arg5: memref<1x128xf32, #tpu.memory_space<vmem>>) attributes {dimension_semantics = [#tpu.dimension_semantics<parallel>], iteration_bounds = array<i64: 1>, scalar_prefetch = 0 : i64, scratch_operands = 0 : i64, tpu.core_type = #tpu.core_type<tc>, window_params = [{transform_indices = @transform_0, window_bounds = array<i64: 128, 128>}, {transform_indices = @transform_1, window_bounds = array<i64: 128, 128>}, {pipeline_mode = #tpu.pipeline_mode<synchronous>, transform_indices = @transform_2, window_bounds = array<i64: 8, 128>}, {transform_indices = @transform_3, window_bounds = array<i64: 128, 1>}, {transform_indices = @transform_4, window_bounds = array<i64: 1, 128>}]} {
    %c0 = arith.constant 0 : index
    %c0_0 = arith.constant 0 : index
    %0 = vector.load %arg1[%c0, %c0_0] : memref<128x128xf32, #tpu.memory_space<vmem>>, vector<128x128xf32>
    %c0_1 = arith.constant 0 : index
    %c0_2 = arith.constant 0 : index
    %1 = vector.load %arg2[%c0_1, %c0_2] : memref<128x128xf32, #tpu.memory_space<vmem>>, vector<128x128xf32>
    %c0_3 = arith.constant 0 : index
    %c0_4 = arith.constant 0 : index
    %2 = vector.load %arg3[%c0_3, %c0_4] : memref<8x128xf32, #tpu.memory_space<vmem>>, vector<8x128xf32>
    %c0_5 = arith.constant 0 : index
    %c0_6 = arith.constant 0 : index
    %3 = vector.load %arg4[%c0_5, %c0_6] : memref<128x1xi32, #tpu.memory_space<vmem>>, vector<128x1xi32>
    %4 = tpu.iota {dimensions = array<i32: 1>} : vector<128x8xi32>
    %5 = vector.broadcast %3 : vector<128x1xi32> to vector<128x8xi32>
    %6 = arith.cmpi eq, %4, %5 : vector<128x8xi32>
    %7 = arith.extui %6 : vector<128x8xi1> to vector<128x8xi32>
    %8 = arith.sitofp %7 : vector<128x8xi32> to vector<128x8xf32>
    %cst = arith.constant dense<0.000000e+00> : vector<128x128xf32>
    %9 = tpu.matmul %8, %2, %cst {dimension_numbers = #tpu.dot_dimension_numbers<[1], [0], [0], [1], [0, 0, 1, 1], [], []>} : vector<128x8xf32>, vector<8x128xf32>, vector<128x128xf32> -> vector<128x128xf32>
    %10 = arith.addf %0, %9 : vector<128x128xf32>
    %11 = arith.subf %10, %1 : vector<128x128xf32>
    %12 = arith.mulf %11, %11 : vector<128x128xf32>
    %cst_7 = arith.constant dense<0.000000e+00> : vector<128xf32>
    %13 = vector.multi_reduction <add>, %12, %cst_7 [1] : vector<128x128xf32> to vector<128xf32>
    %14 = vector.shape_cast %13 : vector<128xf32> to vector<128x1xf32>
    %15 = math.sqrt %14 : vector<128x1xf32>
    %cst_8 = arith.constant 0.000000e+00 : f32
    %16 = vector.broadcast %cst_8 : f32 to vector<128x1xf32>
    %17 = arith.subf %16, %15 : vector<128x1xf32>
    %18 = tpu.transpose %17, [1, 0] : vector<128x1xf32> -> vector<1x128xf32>
    %c0_9 = arith.constant 0 : index
    %c0_10 = arith.constant 0 : index
    %19 = vector.load %arg5[%c0_9, %c0_10] : memref<1x128xf32, #tpu.memory_space<vmem>>, vector<1x128xf32>
    tpu.vector_store %arg5[%c0_9, %c0_10], %18 {strides = array<i32>} : memref<1x128xf32, #tpu.memory_space<vmem>>, vector<1x128xf32>,
    return
  }
  func.func @transform_0(%arg0: i32) -> (i32, i32) {
    %c0_i32 = arith.constant 0 : i32
    %c0_i32_0 = arith.constant 0 : i32
    return %arg0, %c0_i32 : i32, i32
  }
  func.func @transform_1(%arg0: i32) -> (i32, i32) {
    %c0_i32 = arith.constant 0 : i32
    %c0_i32_0 = arith.constant 0 : i32
    return %arg0, %c0_i32 : i32, i32
  }
  func.func @transform_2(%arg0: i32) -> (i32, i32) {
    %c0_i32 = arith.constant 0 : i32
    %c0_i32_0 = arith.constant 0 : i32
    %c0_i32_1 = arith.constant 0 : i32
    return %c0_i32, %c0_i32_0 : i32, i32
  }
  func.func @transform_3(%arg0: i32) -> (i32, i32) {
    %c0_i32 = arith.constant 0 : i32
    %c0_i32_0 = arith.constant 0 : i32
    return %arg0, %c0_i32 : i32, i32
  }
  func.func @transform_4(%arg0: i32) -> (i32, i32) {
    %c0_i32 = arith.constant 0 : i32
    %c0_i32_0 = arith.constant 0 : i32
    return %c0_i32, %arg0 : i32, i32
  }
}

</mosaic_0001>

<bundles_post_ra>
// kernel: tpu_custom_call.1
= control target key start
LH: loop header
LB: loop body
LE: loop exit
PB: predicated region body
PF: predicated region fallthrough
CT: control target
= control target key end

     0   :  { %9 = vsyncpa [#allocation3], 0  ;;  %s1073_s0 = inlined_call_operand.vmem [shape: f32[128,128], index: 0, kind: input, shape index: {}]   ;;  %s1074_s1 = inlined_call_operand.hbm [shape: f32[128,128], index: 1, kind: input, shape index: {}]   ;;  %s1075_s2 = inlined_call_operand.hbm [shape: f32[8,128], index: 2, kind: input, shape index: {}]   ;;  %s1076_s3 = inlined_call_operand.vmem [shape: s32[128,1], index: 3, kind: input, shape index: {}]   ;;  %s1077_s4 = inlined_call_operand.hbm [shape: f32[1,128], index: 4, kind: output, shape index: {}]  }
   0x1   :  { %10 = vsyncpa [#allocation6], 0 }
   0x2   :  { %11 = vsyncpa [#allocation4], 0  ;;  %s18_s17 = sshll.u32 %s1074_s1, 4  ;;  %s803_s18 = smov [#allocation2]   ;;  %s19_s17 = int_to_ptr.hbm [resolvable:$true] %s18_s17 }
   0x3   :  { %s20_s19 = sshll.u32 %s803_s18, 4  ;;  %s32_s22 = sshll.u32 %s1075_s2, 4  ;;  %s21_s19 = int_to_ptr.vmem [resolvable:$true] %s20_s19  ;;  %s33_s22 = int_to_ptr.hbm [resolvable:$true] %s32_s22 }
   0x4   :  { %s804_s23 = smov 128   ;;  %s805_s24 = smov 8  }
   0x5   :  { %26 = dma.hbm_to_vmem [thread:$0]  %s19_s17, 2048, %s21_s19, [#allocation3], %s804_s23, %s804_s23, %s805_s24  }
   0x6   :  { %s806_s25 = smov [#allocation5]  }
   0x7   :  { %s34_s26 = sshll.u32 %s806_s25, 4  ;;  %s35_s26 = int_to_ptr.vmem [resolvable:$true] %s34_s26 }
   0x8   :  { %37 = dma.hbm_to_vmem [thread:$0]  %s33_s22, 128, %s35_s26, [#allocation6]  }
   0x9   :  { %797 = dma.done.wait [#allocation3], 2048  }
   0xa   :  { %798 = vsyncadd [#allocation3], 4294965248 }
   0xb   :  { %799 = dma.done.wait [#allocation6], 128  }
   0xc   :  { %800 = vsyncadd [#allocation6], 4294967168  ;;  %v807_v0 = vmov 0   ;;  %v85_v1 = vld [vmem:[%s1076_s3 + $0x20] sm:$0xff]  ;;  %v83_v4 = vld [vmem:[%s1076_s3 + $0x10] sm:$0xff]  ;;  %v97_v18 = vlaneseq  ;;  %v808_v21 = vmov 0.0  }
   0xd   :  { %691 = vset.pattern.permute.xlu1 %v807_v0  ;;  %690 = vset.pattern.permute.xlu0 %v807_v0  ;;  %v81_v2 = vld [vmem:[%s1076_s3] sm:$0xff]  ;;  %v82_v5 = vld [vmem:[%s1076_s3 + $0x8] sm:$0xff]  ;;  %v84_v8 = vld [vmem:[%s1076_s3 + $0x18] sm:$0xff]  ;;  %vm195_vm1 = vcmask 64512   ;;  %s637_s8 = sshll.u32 %s1077_s4, 4  ;;  %s638_s8 = int_to_ptr.hbm [resolvable:$true] %s637_s8 }
   0xe   :  { %692 = vset.pattern.permute.xlu2 %v807_v0  ;;  %112 = vperm.xlu1 %691, %v85_v1   ;;  %v89_v3 = vld [vmem:[%s1076_s3 + $0x40] sm:$0xff]  ;;  %v86_v6 = vld [vmem:[%s1076_s3 + $0x28] sm:$0xff]  ;;  %v87_v9 = vld [vmem:[%s1076_s3 + $0x30] sm:$0xff]  ;;  %v889_v19 = vand.u32 127, %v97_v18 }
   0xf   :  { %100 = vperm.xlu0 %690, %v81_v2   ;;  %124 = vperm.xlu2 %692, %v89_v3   ;;  %v90_v7 = vld [vmem:[%s1076_s3 + $0x48] sm:$0xff]  ;;  %v91_v10 = vld [vmem:[%s1076_s3 + $0x50] sm:$0xff]  ;;  %v93_v11 = vld [vmem:[%s1076_s3 + $0x60] sm:$0xff] }
  0x10   :  { %v88_v12 = vld [vmem:[%s1076_s3 + $0x38] sm:$0xff]  ;;  %v94_v14 = vld [vmem:[%s1076_s3 + $0x68] sm:$0xff]  ;;  %v95_v15 = vld [vmem:[%s1076_s3 + $0x70] sm:$0xff] }
  0x11   :  { %v92_v13 = vld [vmem:[%s1076_s3 + $0x58] sm:$0xff]  ;;  %v80_v17 = vld [vmem:[#allocation5] sm:$0xff]  ;;  %v49_v63 = vld [vmem:[%s1073_s0 + $0x8] sm:$0xff] }
  0x12   :  { %v96_v16 = vld [vmem:[%s1076_s3 + $0x78] sm:$0xff]  ;;  %259 = vmatpush.msra.mxu0 %v80_v17  ;;  %680 = vmatpush.msra.mxu1 %v80_v17  ;;  %v48_v53 = vld [vmem:[%s1073_s0] sm:$0xff]  ;;  %v65_v3 = vld [vmem:[#allocation2 + $0x8] sm:$0xff] }
  0x13   :  { %681 = vmatpush.msra.mxu2 %v80_v17  ;;  %682 = vmatpush.msra.mxu3 %v80_v17  ;;  %v52_v55 = vld [vmem:[%s1073_s0 + $0x20] sm:$0xff]  ;;  %v70_v17 = vld [vmem:[#allocation2 + $0x30] sm:$0xff] }
  0x14   :  { %v64_v57 = vld [vmem:[#allocation2] sm:$0xff] }
  0x15   :  { %v68_v61 = vld [vmem:[#allocation2 + $0x20] sm:$0xff] }
  0x16   :  { %106 = vperm.xlu1 %691, %v83_v4  }
  0x17   :  { %103 = vperm.xlu0 %690, %v82_v5   ;;  %115 = vperm.xlu2 %692, %v86_v6  }
  0x1e   :  { %127 = vperm.xlu1 %691, %v90_v7  }
  0x1f   :  { %109 = vperm.xlu0 %690, %v84_v8   ;;  %118 = vperm.xlu2 %692, %v87_v9   ;;  %v50_v9 = vld [vmem:[%s1073_s0 + $0x10] sm:$0xff] }
  0x26   :  { %130 = vperm.xlu1 %691, %v91_v10  }
  0x27   :  { %136 = vperm.xlu0 %690, %v93_v11   ;;  %121 = vperm.xlu2 %692, %v88_v12   ;;  %v54_v11 = vld [vmem:[%s1073_s0 + $0x30] sm:$0xff] }
  0x28   :  { %v66_v12 = vld [vmem:[#allocation2 + $0x10] sm:$0xff] }
  0x2e   :  { %133 = vperm.xlu1 %691, %v92_v13  }
  0x2f   :  { %139 = vperm.xlu0 %690, %v94_v14   ;;  %142 = vperm.xlu2 %692, %v95_v15  }
  0x37   :  { %145 = vperm.xlu0 %690, %v96_v16  }
  0x69   :  { %v125_v20 = vpop.permute.xlu2 %124 }
  0x6a   :  { %vm155_vm0 = vcmp.eq.s32.totalorder %v889_v19, %v125_v20  ;;  %v51_v20 = vld [vmem:[%s1073_s0 + $0x18] sm:$0xff] }
  0x6b   :  { %v656_v22 = vsel %vm155_vm0, 1.0, %v808_v21 }
  0x6c   :  { %672 = vmatmul.msk.f32.vlgmr.msra.gmra.mxu2 %vm195_vm1, %v656_v22 }
  0x71   :  { %v116_v25 = vpop.permute.xlu2 %115 }
  0x72   :  { %vm152_vm4 = vcmp.eq.s32.totalorder %v889_v19, %v116_v25  ;;  %v53_v25 = vld [vmem:[%s1073_s0 + $0x28] sm:$0xff] }
  0x73   :  { %v653_v28 = vsel %vm152_vm4, 1.0, %v808_v21 }
  0x79   :  { %v119_v32 = vpop.permute.xlu2 %118 }
  0x7a   :  { %vm153_vm6 = vcmp.eq.s32.totalorder %v889_v19, %v119_v32 }
  0x7b   :  { %v654_v35 = vsel %vm153_vm6, 1.0, %v808_v21 }
  0x80   :  { %v113_v23 = vpop.permute.xlu1 %112 }
  0x81   :  { %v101_v24 = vpop.permute.xlu0 %100  ;;  %vm151_vm2 = vcmp.eq.s32.totalorder %v889_v19, %v113_v23  ;;  %v122_v38 = vpop.permute.xlu2 %121  ;;  %v67_v23 = vld [vmem:[#allocation2 + $0x18] sm:$0xff] }
  0x82   :  { %vm147_vm3 = vcmp.eq.s32.totalorder %v889_v19, %v101_v24  ;;  %v652_v26 = vsel %vm151_vm2, 1.0, %v808_v21  ;;  %vm154_vm9 = vcmp.eq.s32.totalorder %v889_v19, %v122_v38 }
  0x83   :  { %v648_v27 = vsel %vm147_vm3, 1.0, %v808_v21  ;;  %668 = vmatmul.msk.f32.vlgmr.msra.gmra.mxu1 %vm195_vm1, %v652_v26  ;;  %v655_v41 = vsel %vm154_vm9, 1.0, %v808_v21  ;;  %v57_v26 = vld [vmem:[%s1073_s0 + $0x48] sm:$0xff] }
  0x84   :  { %664 = vmatmul.msk.f32.vlgmr.msra.gmra.mxu0 %vm195_vm1, %v648_v27 }
  0x88   :  { %v107_v29 = vpop.permute.xlu1 %106 }
  0x89   :  { %v104_v30 = vpop.permute.xlu0 %103  ;;  %vm149_vm7 = vcmp.eq.s32.totalorder %v889_v19, %v107_v29  ;;  %v143_v49 = vpop.permute.xlu2 %142  ;;  %v58_v29 = vld [vmem:[%s1073_s0 + $0x50] sm:$0xff] }
  0x8a   :  { %vm148_vm5 = vcmp.eq.s32.totalorder %v889_v19, %v104_v30  ;;  %v650_v36 = vsel %vm149_vm7, 1.0, %v808_v21  ;;  %vm161_vm15 = vcmp.eq.s32.totalorder %v889_v19, %v143_v49 }
  0x8b   :  { %v649_v31 = vsel %vm148_vm5, 1.0, %v808_v21  ;;  %669 = vmatmul.msk.f32.gmra.mxu1 %vm195_vm1, %v653_v28  ;;  %v662_v52 = vsel %vm161_vm15, 1.0, %v808_v21 }
  0x8c   :  { %665 = vmatmul.msk.f32.gmra.mxu0 %vm195_vm1, %v649_v31 }
  0x90   :  { %v128_v33 = vpop.permute.xlu1 %127 }
  0x91   :  { %v110_v34 = vpop.permute.xlu0 %109  ;;  %vm156_vm8 = vcmp.eq.s32.totalorder %v889_v19, %v128_v33 }
  0x92   :  { %v657_v37 = vsel %vm156_vm8, 1.0, %v808_v21  ;;  %vm150_vm10 = vcmp.eq.s32.totalorder %v889_v19, %v110_v34  ;;  %v74_v34 = vld [vmem:[#allocation2 + $0x50] sm:$0xff] }
  0x93   :  { %673 = vmatmul.msk.f32.gmra.mxu2 %vm195_vm1, %v657_v37  ;;  %670 = vmatmul.msk.f32.gmra.mxu1 %vm195_vm1, %v654_v35  ;;  %v651_v42 = vsel %vm150_vm10, 1.0, %v808_v21  ;;  %v73_v35 = vld [vmem:[#allocation2 + $0x48] sm:$0xff] }
  0x94   :  { %666 = vmatmul.msk.f32.gmra.mxu0 %vm195_vm1, %v650_v36  ;;  %v69_v36 = vld [vmem:[#allocation2 + $0x28] sm:$0xff] }
  0x98   :  { %v131_v39 = vpop.permute.xlu1 %130 }
  0x99   :  { %v137_v40 = vpop.permute.xlu0 %136  ;;  %vm157_vm11 = vcmp.eq.s32.totalorder %v889_v19, %v131_v39  ;;  %v55_v39 = vld [vmem:[%s1073_s0 + $0x38] sm:$0xff] }
  0x9a   :  { %vm159_vm12 = vcmp.eq.s32.totalorder %v889_v19, %v137_v40  ;;  %v658_v43 = vsel %vm157_vm11, 1.0, %v808_v21 }
  0x9b   :  { %v660_v44 = vsel %vm159_vm12, 1.0, %v808_v21  ;;  %674 = vmatmul.msk.f32.gmra.mxu2 %vm195_vm1, %v658_v43  ;;  %671 = vmatmul.msk.f32.gmra.mxu1 %vm195_vm1, %v655_v41 }
  0x9c   :  { %667 = vmatmul.msk.f32.gmra.mxu0 %vm195_vm1, %v651_v42  ;;  %676 = vmatmul.msk.f32.vlgmr.msra.gmra.mxu3 %vm195_vm1, %v660_v44  ;;  %v56_v44 = vld [vmem:[%s1073_s0 + $0x40] sm:$0xff] }
  0xa0   :  { %v134_v45 = vpop.permute.xlu1 %133 }
  0xa1   :  { %v140_v46 = vpop.permute.xlu0 %139  ;;  %vm158_vm13 = vcmp.eq.s32.totalorder %v889_v19, %v134_v45  ;;  %v60_v45 = vld [vmem:[%s1073_s0 + $0x60] sm:$0xff] }
  0xa2   :  { %vm160_vm14 = vcmp.eq.s32.totalorder %v889_v19, %v140_v46  ;;  %v659_v47 = vsel %vm158_vm13, 1.0, %v808_v21 }
  0xa3   :  { %v661_v48 = vsel %vm160_vm14, 1.0, %v808_v21  ;;  %675 = vmatmul.msk.f32.gmra.mxu2 %vm195_vm1, %v659_v47 }
  0xa4   :  { %677 = vmatmul.msk.f32.gmra.mxu3 %vm195_vm1, %v661_v48  ;;  %v71_v48 = vld [vmem:[#allocation2 + $0x38] sm:$0xff] }
  0xa9   :  { %v146_v50 = vpop.permute.xlu0 %145 }
  0xaa   :  { %vm162_vm0 = vcmp.eq.s32.totalorder %v889_v19, %v146_v50 }
  0xab   :  { %v663_v51 = vsel %vm162_vm0, 1.0, %v808_v21 }
  0xac   :  { %678 = vmatmul.msk.f32.gmra.mxu3 %vm195_vm1, %v662_v52 }
  0xb4   :  { %679 = vmatmul.msk.f32.gmra.mxu3 %vm195_vm1, %v663_v51 }
  0xef   :  { %v285_v7 = vpop.f32.mrf.mxu2 }
  0xf0   :  { %v317_v49 = vadd.f32 %v285_v7, %v56_v44 }
 0x100   :  { %v273_v56 = vpop.f32.mrf.mxu1 }
 0x101   :  { %v261_v54 = vpop.f32.mrf.mxu0  ;;  %v313_v59 = vadd.f32 %v273_v56, %v52_v55 }
 0x102   :  { %v309_v58 = vadd.f32 %v261_v54, %v48_v53  ;;  %v76_v53 = vld [vmem:[#allocation2 + $0x60] sm:$0xff] }
 0x103   :  { %v329_v0 = vsub.f32 %v313_v59, %v68_v61  ;;  %v72_v54 = vld [vmem:[#allocation2 + $0x40] sm:$0xff] }
 0x104   :  { %v325_v60 = vsub.f32 %v309_v58, %v64_v57  ;;  %v61_v57 = vld [vmem:[%s1073_s0 + $0x68] sm:$0xff]  ;;  %v333_v59 = vsub.f32 %v317_v49, %v72_v54 }
 0x105   :  { %v345_v6 = vmul.f32 %v329_v0, %v329_v0  ;;  %v77_v0 = vld [vmem:[#allocation2 + $0x68] sm:$0xff] }
 0x106   :  { %v341_v62 = vmul.f32 %v325_v60, %v325_v60  ;;  %v59_v60 = vld [vmem:[%s1073_s0 + $0x58] sm:$0xff] }
 0x108   :  { %357 = vadd.xlane.f32.xlu1 %v341_v62  ;;  %v276_v2 = vpop.f32.mrf.mxu1 }
 0x109   :  { %v264_v1 = vpop.f32.mrf.mxu0  ;;  %v314_v30 = vadd.f32 %v276_v2, %v53_v25 }
 0x10a   :  { %v310_v4 = vadd.f32 %v264_v1, %v49_v63 }
 0x10b   :  { %v330_v43 = vsub.f32 %v314_v30, %v69_v36 }
 0x10c   :  { %v326_v5 = vsub.f32 %v310_v4, %v65_v3  ;;  %v349_v3 = vmul.f32 %v333_v59, %v333_v59  ;;  %v75_v4 = vld [vmem:[#allocation2 + $0x58] sm:$0xff] }
 0x10d   :  { %v346_v52 = vmul.f32 %v330_v43, %v330_v43 }
 0x10e   :  { %v342_v8 = vmul.f32 %v326_v5, %v326_v5 }
 0x110   :  { %359 = vadd.xlane.f32.xlu2 %v342_v8  ;;  %365 = vadd.xlane.f32.xlu1 %v345_v6  ;;  %v279_v14 = vpop.f32.mrf.mxu1  ;;  %v62_v8 = vld [vmem:[%s1073_s0 + $0x70] sm:$0xff] }
 0x111   :  { %v267_v10 = vpop.f32.mrf.mxu0  ;;  %v315_v15 = vadd.f32 %v279_v14, %v54_v11  ;;  %v63_v11 = vld [vmem:[%s1073_s0 + $0x78] sm:$0xff]  ;;  %s809_s0 = smov [#allocation7]  }
 0x112   :  { %v311_v13 = vadd.f32 %v267_v10, %v50_v9  ;;  %s635_s5 = sshll.u32 %s809_s0, 4  ;;  %s636_s5 = int_to_ptr.vmem [resolvable:$true] %s635_s5 }
 0x113   :  { %v331_v21 = vsub.f32 %v315_v15, %v70_v17  ;;  %v79_v15 = vld [vmem:[#allocation2 + $0x78] sm:$0xff] }
 0x114   :  { %v327_v16 = vsub.f32 %v311_v13, %v66_v12  ;;  %v78_v13 = vld [vmem:[#allocation2 + $0x70] sm:$0xff] }
 0x115   :  { %v347_v27 = vmul.f32 %v331_v21, %v331_v21 }
 0x116   :  { %v343_v18 = vmul.f32 %v327_v16, %v327_v16  ;;  %v288_v19 = vpop.f32.mrf.mxu2 }
 0x117   :  { %v318_v31 = vadd.f32 %v288_v19, %v57_v26 }
 0x118   :  { %361 = vadd.xlane.f32.xlu0 %v343_v18  ;;  %v282_v40 = vpop.f32.mrf.mxu1 }
 0x119   :  { %v270_v22 = vpop.f32.mrf.mxu0  ;;  %v334_v42 = vsub.f32 %v318_v31, %v73_v35  ;;  %v316_v46 = vadd.f32 %v282_v40, %v55_v39 }
 0x11a   :  { %v312_v24 = vadd.f32 %v270_v22, %v51_v20 }
 0x11b   :  { %v350_v51 = vmul.f32 %v334_v42, %v334_v42  ;;  %v332_v56 = vsub.f32 %v316_v46, %v71_v48 }
 0x11c   :  { %v328_v28 = vsub.f32 %v312_v24, %v67_v23 }
 0x11d   :  { %v348_v63 = vmul.f32 %v332_v56, %v332_v56 }
 0x11e   :  { %v344_v32 = vmul.f32 %v328_v28, %v328_v28  ;;  %v291_v33 = vpop.f32.mrf.mxu2 }
 0x11f   :  { %v319_v37 = vadd.f32 %v291_v33, %v58_v29  ;;  %v297_v38 = vpop.f32.mrf.mxu3 }
 0x120   :  { %369 = vadd.xlane.f32.xlu0 %v347_v27  ;;  %363 = vadd.xlane.f32.xlu2 %v344_v32  ;;  %v321_v50 = vadd.f32 %v297_v38, %v60_v45 }
 0x121   :  { %v335_v41 = vsub.f32 %v319_v37, %v74_v34 }
 0x122   :  { %v337_v58 = vsub.f32 %v321_v50, %v76_v53 }
 0x123   :  { %v351_v47 = vmul.f32 %v335_v41, %v335_v41 }
 0x124   :  { %v353_v2 = vmul.f32 %v337_v58, %v337_v58 }
 0x125   :  { %377 = vadd.xlane.f32.xlu1 %v351_v47 }
 0x126   :  { %v294_v61 = vpop.f32.mrf.mxu2 }
 0x127   :  { %v300_v55 = vpop.f32.mrf.mxu3  ;;  %v320_v1 = vadd.f32 %v294_v61, %v59_v60 }
 0x128   :  { %375 = vadd.xlane.f32.xlu0 %v350_v51  ;;  %367 = vadd.xlane.f32.xlu2 %v346_v52  ;;  %v322_v62 = vadd.f32 %v300_v55, %v61_v57 }
 0x129   :  { %v336_v7 = vsub.f32 %v320_v1, %v75_v4 }
 0x12a   :  { %v338_v6 = vsub.f32 %v322_v62, %v77_v0 }
 0x12b   :  { %v352_v12 = vmul.f32 %v336_v7, %v336_v7 }
 0x12c   :  { %v354_v9 = vmul.f32 %v338_v6, %v338_v6 }
 0x12d   :  { %371 = vadd.xlane.f32.xlu1 %v348_v63 }
 0x12f   :  { %v303_v5 = vpop.f32.mrf.mxu3 }
 0x130   :  { %381 = vadd.xlane.f32.xlu0 %v353_v2  ;;  %373 = vadd.xlane.f32.xlu2 %v349_v3  ;;  %v323_v10 = vadd.f32 %v303_v5, %v62_v8 }
 0x132   :  { %v339_v17 = vsub.f32 %v323_v10, %v78_v13 }
 0x134   :  { %v355_v20 = vmul.f32 %v339_v17, %v339_v17 }
 0x135   :  { %383 = vadd.xlane.f32.xlu1 %v354_v9 }
 0x137   :  { %v306_v14 = vpop.f32.mrf.mxu3 }
 0x138   :  { %379 = vadd.xlane.f32.xlu2 %v352_v12  ;;  %v324_v16 = vadd.f32 %v306_v14, %v63_v11 }
 0x13a   :  { %v340_v18 = vsub.f32 %v324_v16, %v79_v15 }
 0x13c   :  { %v356_v19 = vmul.f32 %v340_v18, %v340_v18 }
 0x13e   :  { %387 = vadd.xlane.f32.xlu0 %v356_v19 }
 0x140   :  { %385 = vadd.xlane.f32.xlu2 %v355_v20 }
 0x17b   :  { %v358_v21 = vpop.xlane.xlu1 %357 }
 0x17c   :  { %693 = vrsqrt.f32 %v358_v21  ;;  %vm396_vm1 = vcmp.eq.f32.partialorder %v358_v21, inf  ;;  %v399_v35 = vand.u32 2147483648, %v358_v21  ;;  %vm398_vm2 = vcmp.eq.f32.partialorder %v358_v21, 0.0 }
 0x182   :  { %v694_v22 = vpop.eup %693 }
 0x183   :  { %v390_v23 = vmul.f32 %v694_v22, %v358_v21  ;;  %v360_v24 = vpop.xlane.xlu2 %359  ;;  %v971_v27 = vpop.xlane.xlu1 %365 }
 0x184   :  { %695 = vrsqrt.f32 %v360_v24  ;;  %vm408_vm3 = vcmp.eq.f32.partialorder %v360_v24, inf  ;;  %v411_v49 = vand.u32 2147483648, %v360_v24  ;;  %vm410_vm4 = vcmp.eq.f32.partialorder %v360_v24, 0.0 }
 0x185   :  { %v391_v25 = vmul.f32 %v694_v22, %v390_v23  ;;  %697 = vrsqrt.f32 %v971_v27  ;;  %vm444_vm9 = vcmp.eq.f32.partialorder %v971_v27, inf  ;;  %vm446_vm10 = vcmp.eq.f32.partialorder %v971_v27, 0.0 }
 0x187   :  { %v392_v26 = vmul.f32 0.5, %v391_v25 }
 0x189   :  { %v393_v28 = vsub.f32 1.5, %v392_v26 }
 0x18a   :  { %v696_v29 = vpop.eup %695 }
 0x18b   :  { %v402_v30 = vmul.f32 %v696_v29, %v360_v24  ;;  %v362_v31 = vpop.xlane.xlu0 %361  ;;  %v394_v32 = vmul.f32 %v694_v22, %v393_v28  ;;  %v698_v39 = vpop.eup %697 }
 0x18c   :  { %699 = vrsqrt.f32 %v362_v31  ;;  %v438_v46 = vmul.f32 %v698_v39, %v971_v27  ;;  %vm420_vm5 = vcmp.eq.f32.partialorder %v362_v31, inf  ;;  %v423_v1 = vand.u32 2147483648, %v362_v31 }
 0x18d   :  { %v403_v33 = vmul.f32 %v696_v29, %v402_v30  ;;  %v395_v34 = vmul.f32 %v394_v32, %v358_v21  ;;  %vm422_vm6 = vcmp.eq.f32.partialorder %v362_v31, 0.0  ;;  %v447_v32 = vand.u32 2147483648, %v971_v27 }
 0x18e   :  { %v439_v52 = vmul.f32 %v698_v39, %v438_v46 }
 0x18f   :  { %v404_v36 = vmul.f32 0.5, %v403_v33  ;;  %v397_v37 = vsel %vm396_vm1, %v358_v21, %v395_v34 }
 0x190   :  { %v400_v38 = vsel %vm398_vm2, %v399_v35, %v397_v37  ;;  %v440_v61 = vmul.f32 0.5, %v439_v52 }
 0x191   :  { %v581_v40 = vsub.f32 0.0, %v400_v38  ;;  %v405_v41 = vsub.f32 1.5, %v404_v36 }
 0x192   :  { %v700_v42 = vpop.eup %699  ;;  %v441_v5 = vsub.f32 1.5, %v440_v61 }
 0x193   :  { %v414_v43 = vmul.f32 %v700_v42, %v362_v31  ;;  %v364_v44 = vpop.xlane.xlu2 %363  ;;  %597 = vxpose.xlu1.b32.start [1/16] (narrow) %v581_v40, 8  ;;  %v406_v45 = vmul.f32 %v696_v29, %v405_v41  ;;  %v975_v53 = vpop.xlane.xlu0 %369 }
 0x194   :  { %701 = vrsqrt.f32 %v364_v44  ;;  %v442_v14 = vmul.f32 %v698_v39, %v441_v5  ;;  %vm432_vm7 = vcmp.eq.f32.partialorder %v364_v44, inf  ;;  %vm434_vm8 = vcmp.eq.f32.partialorder %v364_v44, 0.0 }
 0x195   :  { %v415_v47 = vmul.f32 %v700_v42, %v414_v43  ;;  %v407_v48 = vmul.f32 %v406_v45, %v360_v24  ;;  %703 = vrsqrt.f32 %v975_v53  ;;  %v435_v17 = vand.u32 2147483648, %v364_v44 }
 0x196   :  { %v443_v22 = vmul.f32 %v442_v14, %v971_v27  ;;  %vm468_vm13 = vcmp.eq.f32.partialorder %v975_v53, inf  ;;  %vm470_vm14 = vcmp.eq.f32.partialorder %v975_v53, 0.0 }
 0x197   :  { %v416_v50 = vmul.f32 0.5, %v415_v47  ;;  %v409_v51 = vsel %vm408_vm3, %v360_v24, %v407_v48 }
 0x198   :  { %v412_v54 = vsel %vm410_vm4, %v411_v49, %v409_v51  ;;  %v977_v55 = vpop.xlane.xlu1 %377  ;;  %v445_v30 = vsel %vm444_vm9, %v971_v27, %v443_v22 }
 0x199   :  { %v582_v56 = vsub.f32 0.0, %v412_v54  ;;  %v417_v57 = vsub.f32 1.5, %v416_v50  ;;  %v448_v33 = vsel %vm446_vm10, %v447_v32, %v445_v30 }
 0x19a   :  { %v702_v58 = vpop.eup %701  ;;  %v585_v39 = vsub.f32 0.0, %v448_v33 }
 0x19b   :  { %v980_v59 = vpop.xlane.xlu2 %367  ;;  %598 = vxpose.xlu1.b32.cont [2/16] (narrow) %v582_v56, 8  ;;  %v418_v60 = vmul.f32 %v700_v42, %v417_v57  ;;  %v426_v62 = vmul.f32 %v702_v58, %v364_v44  ;;  %v704_v6 = vpop.eup %703  ;;  %v471_v56 = vand.u32 2147483648, %v975_v53 }
 0x19c   :  { %705 = vrsqrt.f32 %v980_v59  ;;  %v462_v11 = vmul.f32 %v704_v6, %v975_v53  ;;  %v997_v34 = vpop.xlane.xlu0 %375  ;;  %vm456_vm11 = vcmp.eq.f32.partialorder %v980_v59, inf  ;;  %v459_v43 = vand.u32 2147483648, %v980_v59 }
 0x19d   :  { %v419_v63 = vmul.f32 %v418_v60, %v362_v31  ;;  %v427_v0 = vmul.f32 %v702_v58, %v426_v62  ;;  %vm458_vm12 = vcmp.eq.f32.partialorder %v980_v59, 0.0  ;;  %vm504_vm3 = vcmp.eq.f32.partialorder %v997_v34, inf }
 0x19e   :  { %v463_v18 = vmul.f32 %v704_v6, %v462_v11  ;;  %vm506_vm4 = vcmp.eq.f32.partialorder %v997_v34, 0.0 }
 0x19f   :  { %v421_v2 = vsel %vm420_vm5, %v362_v31, %v419_v63  ;;  %v428_v3 = vmul.f32 0.5, %v427_v0  ;;  %vm516_vm5 = vcmp.eq.f32.partialorder %v977_v55, inf }
 0x1a0   :  { %v424_v4 = vsel %vm422_vm6, %v423_v1, %v421_v2  ;;  %v983_v7 = vpop.xlane.xlu1 %371  ;;  %v464_v28 = vmul.f32 0.5, %v463_v18  ;;  %vm518_vm6 = vcmp.eq.f32.partialorder %v977_v55, 0.0 }
 0x1a1   :  { %v583_v8 = vsub.f32 0.0, %v424_v4  ;;  %v429_v9 = vsub.f32 1.5, %v428_v3  ;;  %707 = vrsqrt.f32 %v983_v7  ;;  %vm480_vm15 = vcmp.eq.f32.partialorder %v983_v7, inf }
 0x1a2   :  { %v706_v10 = vpop.eup %705  ;;  %v465_v37 = vsub.f32 1.5, %v464_v28  ;;  %v483_v3 = vand.u32 2147483648, %v983_v7  ;;  %vm482_vm0 = vcmp.eq.f32.partialorder %v983_v7, 0.0  ;;  %v507_v28 = vand.u32 2147483648, %v997_v34 }
 0x1a3   :  { %599 = vxpose.xlu1.b32.cont [3/16] (narrow) %v583_v8, 8  ;;  %v450_v12 = vmul.f32 %v706_v10, %v980_v59  ;;  %v430_v13 = vmul.f32 %v702_v58, %v429_v9  ;;  %v988_v20 = vpop.xlane.xlu2 %373 }
 0x1a4   :  { %709 = vrsqrt.f32 %v988_v20  ;;  %v466_v27 = vmul.f32 %v704_v6, %v465_v37  ;;  %v1022_v6 = vpop.xlane.xlu0 %381  ;;  %vm492_vm1 = vcmp.eq.f32.partialorder %v988_v20, inf  ;;  %vm494_vm2 = vcmp.eq.f32.partialorder %v988_v20, 0.0 }
 0x1a5   :  { %v451_v15 = vmul.f32 %v706_v10, %v450_v12  ;;  %v431_v16 = vmul.f32 %v430_v13, %v364_v44  ;;  %711 = vrsqrt.f32 %v997_v34  ;;  %vm540_vm9 = vcmp.eq.f32.partialorder %v1022_v6, inf }
 0x1a6   :  { %v467_v46 = vmul.f32 %v466_v27, %v975_v53  ;;  %713 = vrsqrt.f32 %v977_v55  ;;  %vm542_vm10 = vcmp.eq.f32.partialorder %v1022_v6, 0.0 }
 0x1a7   :  { %v452_v19 = vmul.f32 0.5, %v451_v15  ;;  %v433_v21 = vsel %vm432_vm7, %v364_v44, %v431_v16  ;;  %v708_v23 = vpop.eup %707  ;;  %v495_v15 = vand.u32 2147483648, %v988_v20 }
 0x1a8   :  { %v436_v24 = vsel %vm434_vm8, %v435_v17, %v433_v21  ;;  %v474_v29 = vmul.f32 %v708_v23, %v983_v7  ;;  %v469_v52 = vsel %vm468_vm13, %v975_v53, %v467_v46  ;;  %v1031_v17 = vpop.xlane.xlu1 %383 }
 0x1a9   :  { %v584_v25 = vsub.f32 0.0, %v436_v24  ;;  %v453_v26 = vsub.f32 1.5, %v452_v19  ;;  %v472_v57 = vsel %vm470_vm14, %v471_v56, %v469_v52 }
 0x1aa   :  { %v475_v35 = vmul.f32 %v708_v23, %v474_v29  ;;  %v710_v38 = vpop.eup %709  ;;  %v587_v63 = vsub.f32 0.0, %v472_v57 }
 0x1ab   :  { %600 = vxpose.xlu1.b32.cont [4/16] (narrow) %v584_v25, 8  ;;  %v454_v31 = vmul.f32 %v706_v10, %v453_v26  ;;  %v486_v41 = vmul.f32 %v710_v38, %v988_v20  ;;  %v712_v48 = vpop.eup %711 }
 0x1ac   :  { %v476_v40 = vmul.f32 0.5, %v475_v35  ;;  %v498_v50 = vmul.f32 %v712_v48, %v997_v34  ;;  %v714_v62 = vpop.eup %713 }
 0x1ad   :  { %v455_v36 = vmul.f32 %v454_v31, %v980_v59  ;;  %v487_v45 = vmul.f32 %v710_v38, %v486_v41  ;;  %v510_v0 = vmul.f32 %v714_v62, %v977_v55 }
 0x1ae   :  { %v477_v47 = vsub.f32 1.5, %v476_v40  ;;  %v499_v58 = vmul.f32 %v712_v48, %v498_v50  ;;  %v519_v40 = vand.u32 2147483648, %v977_v55 }
 0x1af   :  { %v457_v42 = vsel %vm456_vm11, %v980_v59, %v455_v36  ;;  %v488_v51 = vmul.f32 0.5, %v487_v45  ;;  %v1013_v59 = vpop.xlane.xlu2 %379  ;;  %v511_v5 = vmul.f32 %v714_v62, %v510_v0  ;;  %v543_v0 = vand.u32 2147483648, %v1022_v6 }
 0x1b0   :  { %v460_v44 = vsel %vm458_vm12, %v459_v43, %v457_v42  ;;  %v478_v54 = vmul.f32 %v708_v23, %v477_v47  ;;  %715 = vrsqrt.f32 %v1013_v59  ;;  %v500_v1 = vmul.f32 0.5, %v499_v58 }
 0x1b1   :  { %v586_v49 = vsub.f32 0.0, %v460_v44  ;;  %v489_v61 = vsub.f32 1.5, %v488_v51  ;;  %717 = vrsqrt.f32 %v1022_v6  ;;  %v512_v12 = vmul.f32 0.5, %v511_v5  ;;  %v388_v27 = vpop.xlane.xlu0 %387 }
 0x1b2   :  { %v479_v60 = vmul.f32 %v478_v54, %v983_v7  ;;  %v501_v9 = vsub.f32 1.5, %v500_v1  ;;  %719 = vrsqrt.f32 %v1031_v17  ;;  %vm528_vm7 = vcmp.eq.f32.partialorder %v1013_v59, inf }
 0x1b3   :  { %601 = vxpose.xlu1.b32.cont [5/16] (narrow) %v585_v39, 8  ;;  %v490_v53 = vmul.f32 %v710_v38, %v489_v61  ;;  %v513_v21 = vsub.f32 1.5, %v512_v12  ;;  %vm530_vm8 = vcmp.eq.f32.partialorder %v1013_v59, 0.0  ;;  %vm552_vm11 = vcmp.eq.f32.partialorder %v1031_v17, inf }
 0x1b4   :  { %v481_v2 = vsel %vm480_vm15, %v983_v7, %v479_v60  ;;  %v502_v7 = vmul.f32 %v712_v48, %v501_v9  ;;  %v555_v9 = vand.u32 2147483648, %v1031_v17  ;;  %vm554_vm12 = vcmp.eq.f32.partialorder %v1031_v17, 0.0 }
 0x1b5   :  { %v484_v4 = vsel %vm482_vm0, %v483_v3, %v481_v2  ;;  %v491_v8 = vmul.f32 %v490_v53, %v988_v20  ;;  %vm576_vm15 = vcmp.eq.f32.partialorder %v388_v27, inf  ;;  %vm578_vm0 = vcmp.eq.f32.partialorder %v388_v27, 0.0 }
 0x1b6   :  { %v716_v10 = vpop.eup %715  ;;  %v588_v11 = vsub.f32 0.0, %v484_v4  ;;  %v503_v19 = vmul.f32 %v502_v7, %v997_v34 }
 0x1b7   :  { %v522_v13 = vmul.f32 %v716_v10, %v1013_v59  ;;  %v493_v14 = vsel %vm492_vm1, %v988_v20, %v491_v8  ;;  %v718_v22 = vpop.eup %717  ;;  %v514_v20 = vmul.f32 %v714_v62, %v513_v21  ;;  %v1040_v31 = vpop.xlane.xlu2 %385 }
 0x1b8   :  { %v496_v16 = vsel %vm494_vm2, %v495_v15, %v493_v14  ;;  %v534_v24 = vmul.f32 %v718_v22, %v1022_v6  ;;  %v505_v26 = vsel %vm504_vm3, %v997_v34, %v503_v19  ;;  %v720_v35 = vpop.eup %719  ;;  %721 = vrsqrt.f32 %v1040_v31 }
 0x1b9   :  { %v523_v18 = vmul.f32 %v716_v10, %v522_v13  ;;  %v589_v23 = vsub.f32 0.0, %v496_v16  ;;  %v508_v29 = vsel %vm506_vm4, %v507_v28, %v505_v26  ;;  %v515_v32 = vmul.f32 %v514_v20, %v977_v55 }
 0x1ba   :  { %v535_v30 = vmul.f32 %v718_v22, %v534_v24  ;;  %v590_v36 = vsub.f32 0.0, %v508_v29  ;;  %v546_v38 = vmul.f32 %v720_v35, %v1031_v17  ;;  %723 = vrsqrt.f32 %v388_v27 }
 0x1bb   :  { %602 = vxpose.xlu1.b32.cont [6/16] (narrow) %v586_v49, 8  ;;  %v524_v25 = vmul.f32 0.5, %v523_v18  ;;  %v517_v39 = vsel %vm516_vm5, %v977_v55, %v515_v32  ;;  %v531_v55 = vand.u32 2147483648, %v1013_v59  ;;  %vm564_vm13 = vcmp.eq.f32.partialorder %v1040_v31, inf }
 0x1bc   :  { %v536_v37 = vmul.f32 0.5, %v535_v30  ;;  %v520_v41 = vsel %vm518_vm6, %v519_v40, %v517_v39  ;;  %v547_v42 = vmul.f32 %v720_v35, %v546_v38  ;;  %v567_v7 = vand.u32 2147483648, %v1040_v31 }
 0x1bd   :  { %v525_v33 = vsub.f32 1.5, %v524_v25  ;;  %v591_v46 = vsub.f32 0.0, %v520_v41  ;;  %vm566_vm14 = vcmp.eq.f32.partialorder %v1040_v31, 0.0  ;;  %v579_v19 = vand.u32 2147483648, %v388_v27 }
 0x1be   :  { %v537_v44 = vsub.f32 1.5, %v536_v37  ;;  %v722_v45 = vpop.eup %721  ;;  %v548_v47 = vmul.f32 0.5, %v547_v42 }
 0x1bf   :  { %v526_v34 = vmul.f32 %v716_v10, %v525_v33  ;;  %v558_v48 = vmul.f32 %v722_v45, %v1040_v31 }
 0x1c0   :  { %v538_v50 = vmul.f32 %v718_v22, %v537_v44  ;;  %v549_v56 = vsub.f32 1.5, %v548_v47  ;;  %v724_v57 = vpop.eup %723 }
 0x1c1   :  { %v527_v43 = vmul.f32 %v526_v34, %v1013_v59  ;;  %v559_v52 = vmul.f32 %v722_v45, %v558_v48  ;;  %v570_v60 = vmul.f32 %v724_v57, %v388_v27 }
 0x1c2   :  { %v539_v54 = vmul.f32 %v538_v50, %v1022_v6 }
 0x1c3   :  { %603 = vxpose.xlu1.b32.cont [7/16] (narrow) %v587_v63, 8  ;;  %v529_v49 = vsel %vm528_vm7, %v1013_v59, %v527_v43  ;;  %v560_v61 = vmul.f32 0.5, %v559_v52  ;;  %v550_v63 = vmul.f32 %v720_v35, %v549_v56  ;;  %v571_v1 = vmul.f32 %v724_v57, %v570_v60 }
 0x1c4   :  { %v532_v51 = vsel %vm530_vm8, %v531_v55, %v529_v49  ;;  %v541_v62 = vsel %vm540_vm9, %v1022_v6, %v539_v54 }
 0x1c5   :  { %v592_v58 = vsub.f32 0.0, %v532_v51  ;;  %v544_v59 = vsel %vm542_vm10, %v543_v0, %v541_v62  ;;  %v561_v2 = vsub.f32 1.5, %v560_v61  ;;  %v551_v53 = vmul.f32 %v550_v63, %v1031_v17 }
 0x1c6   :  { %v593_v3 = vsub.f32 0.0, %v544_v59  ;;  %v572_v4 = vmul.f32 0.5, %v571_v1 }
 0x1c7   :  { %v562_v5 = vmul.f32 %v722_v45, %v561_v2  ;;  %v553_v8 = vsel %vm552_vm11, %v1031_v17, %v551_v53 }
 0x1c8   :  { %v556_v10 = vsel %vm554_vm12, %v555_v9, %v553_v8 }
 0x1c9   :  { %v563_v6 = vmul.f32 %v562_v5, %v1040_v31  ;;  %v594_v12 = vsub.f32 0.0, %v556_v10 }
 0x1cb   :  { %604 = vxpose.xlu1.b32.cont [8/16] (narrow) %v588_v11, 8  ;;  %v573_v11 = vsub.f32 1.5, %v572_v4  ;;  %v565_v14 = vsel %vm564_vm13, %v1040_v31, %v563_v6 }
 0x1cc   :  { %v568_v15 = vsel %vm566_vm14, %v567_v7, %v565_v14 }
 0x1cd   :  { %v574_v13 = vmul.f32 %v724_v57, %v573_v11  ;;  %v595_v18 = vsub.f32 0.0, %v568_v15 }
 0x1cf   :  { %v575_v16 = vmul.f32 %v574_v13, %v388_v27 }
 0x1d1   :  { %v577_v17 = vsel %vm576_vm15, %v388_v27, %v575_v16 }
 0x1d2   :  { %v580_v21 = vsel %vm578_vm0, %v579_v19, %v577_v17 }
 0x1d3   :  { %605 = vxpose.xlu1.b32.cont [9/16] (narrow) %v589_v23, 8  ;;  %v596_v22 = vsub.f32 0.0, %v580_v21 }
 0x1db   :  { %606 = vxpose.xlu1.b32.cont [10/16] (narrow) %v590_v36, 8 }
 0x1e3   :  { %607 = vxpose.xlu1.b32.cont [11/16] (narrow) %v591_v46, 8 }
 0x1eb   :  { %608 = vxpose.xlu1.b32.cont [12/16] (narrow) %v592_v58, 8 }
 0x1f3   :  { %609 = vxpose.xlu1.b32.cont [13/16] (narrow) %v593_v3, 8 }
 0x1fb   :  { %610 = vxpose.xlu1.b32.cont [14/16] (narrow) %v594_v12, 8 }
 0x203   :  { %611 = vxpose.xlu1.b32.cont [15/16] (narrow) %v595_v18, 8 }
 0x20b   :  { %612 = vxpose.xlu1.b32.end [16/16] (narrow) %v596_v22, 8 }
 0x237   :  { %v613_v23 = vpop.trf.xlu1 }
 0x238   :  { %629 = vst [vmem:[#allocation7] sm:$0x1] %v613_v23 }
 0x239   :  { %640 = dma.vmem_to_hbm [thread:$0]  %s636_s5, 16, %s638_s8, [#allocation4]  }
 0x23a   :  { %801 = dma.done.wait [#allocation4], 16  }
 0x23b   :  { %802 = vsyncadd [#allocation4], 4294967280 }
 0x23c   :  { %645 = vsyncpa [#allocation3], 1 }
 0x23d   :  { %646 = vsyncpa [#allocation6], 1 }
 0x23e   :  { %647 = vsyncpa [#allocation4], 1 }

</bundles_post_ra>
